<compile_context>
chip_gen: v7x
topology: tpu7x:2x2x1
jax: 0.10.0
libtpu: 0.0.40
codegen_flags: <defaults>
</compile_context>

<pallas_src>
import jax
import jax.numpy as jnp
import numpy as np
from jax.experimental import pallas as pl
from jax.experimental.pallas import tpu as pltpu


def _multilinear_kernel(g_ref, f_ref, o_ref):
    """One batch tile.

    g_ref: (TB, Dg)       conditioning vector (class probabilities in CDAN)
    f_ref: (TB, Df)       feature vector
    o_ref: (TB, Dg*Df)    flat outer product: o[b, k*Df + j] = g[b,k] * f[b,j]
    """
    dg = g_ref.shape[-1]
    df = f_ref.shape[-1]
    g = g_ref[...].astype(jnp.float32)   # compute in f32 (v5e VPU has no bf16 ALU)
    f = f_ref[...].astype(jnp.float32)
    # Rank-1 product as Dg lane-broadcast VPU multiplies, stored directly into
    # the lane-dense flat output tile (no MXU, no in-kernel reshape/relayout).
    # Static unroll: Dg is the (small) number of classes in CDAN.
    for k in range(dg):
        o_ref[:, k * df:(k + 1) * df] = (g[:, k:k + 1] * f).astype(o_ref.dtype)


def _pick_batch_tile(batch, flat_dim, itemsize):
    # Target ~4 MiB output blocks: double-buffered that is ~8-9 MiB of VMEM,
    # comfortably inside scoped VMEM on v5e/v6e (128 MiB) and v7x (64 MiB),
    # while big enough to amortize the ~0.35 us per-grid-step overhead.
    target_block_bytes = 4 * 1024 * 1024
    tb = target_block_bytes // max(flat_dim * itemsize, 1)
    tb = max(8, min(1024, (tb // 8) * 8))  # multiple of 8 sublanes
    if batch <= tb:
        return batch  # block dim == full array dim is always a legal BlockSpec
    return tb


def multi_linear_map(f: jax.Array, g: jax.Array) -> jax.Array:
    """Pallas equivalent of MultiLinearMap.forward(f, g):
       torch.bmm(g.unsqueeze(2), f.unsqueeze(1)).view(B, -1)."""
    assert f.ndim == 2 and g.ndim == 2 and f.shape[0] == g.shape[0]
    B, Df = f.shape
    _, Dg = g.shape
    D = Dg * Df
    out_dtype = jnp.promote_types(f.dtype, g.dtype)
    itemsize = jnp.dtype(out_dtype).itemsize

    TB = _pick_batch_tile(B, D, itemsize)
    grid = (pl.cdiv(B, TB),)

    cost = pl.CostEstimate(
        flops=B * D,
        transcendentals=0,
        bytes_accessed=(B * Df + B * Dg + B * D) * itemsize,
    )

    return pl.pallas_call(
        _multilinear_kernel,
        out_shape=jax.ShapeDtypeStruct((B, D), out_dtype),
        grid_spec=pltpu.PrefetchScalarGridSpec(
            num_scalar_prefetch=0,
            grid=grid,
            in_specs=[
                pl.BlockSpec((TB, Dg), lambda b: (b, 0)),   # g batch tile
                pl.BlockSpec((TB, Df), lambda b: (b, 0)),   # f batch tile
            ],
            out_specs=pl.BlockSpec((TB, D), lambda b: (b, 0)),
        ),
        compiler_params=pltpu.CompilerParams(
            # "parallel" lets v7x shard batch tiles across its 2 TensorCores;
            # neutral on single-TC v5e/v6e.
            dimension_semantics=("parallel",),
            vmem_limit_bytes=48 * 1024 * 1024,
        ),
        cost_estimate=cost,
    )(g, f)


if __name__ == "__main__":
    key = jax.random.PRNGKey(0)
    kf, kg = jax.random.split(key)

    B, Df, Dg = 2, 32, 16
    f = jax.random.normal(kf, (B, Df), dtype=jnp.float32)
    g = jax.random.normal(kg, (B, Dg), dtype=jnp.float32)

    out = jax.block_until_ready(multi_linear_map(f, g))

    # Reference: torch.bmm(g.unsqueeze(2), f.unsqueeze(1)).view(B, -1)
    ref = (np.asarray(g)[:, :, None] * np.asarray(f)[:, None, :]).reshape(B, -1)
    assert out.shape == (B, Dg * Df)
    np.testing.assert_allclose(np.asarray(out), ref, rtol=1e-6, atol=1e-6)

    print("KERNEL_OK")
</pallas_src>

<mosaic_0001>
module attributes {stable_mosaic.version = 11 : i64} {
  func.func @_multilinear_kernel(%arg0: i32, %arg1: memref<2x16xf32, #tpu.memory_space<vmem>>, %arg2: memref<2x32xf32, #tpu.memory_space<vmem>>, %arg3: memref<2x512xf32, #tpu.memory_space<vmem>>) attributes {dimension_semantics = [#tpu.dimension_semantics<parallel>], iteration_bounds = array<i64: 1>, scalar_prefetch = 0 : i64, scratch_operands = 0 : i64, tpu.core_type = #tpu.core_type<tc>, window_params = [{transform_indices = @transform_0, window_bounds = array<i64: 2, 16>}, {transform_indices = @transform_1, window_bounds = array<i64: 2, 32>}, {transform_indices = @transform_2, window_bounds = array<i64: 2, 512>}]} {
    %c0 = arith.constant 0 : index
    %c0_0 = arith.constant 0 : index
    %0 = vector.load %arg1[%c0, %c0_0] : memref<2x16xf32, #tpu.memory_space<vmem>>, vector<2x16xf32>
    %c0_1 = arith.constant 0 : index
    %c0_2 = arith.constant 0 : index
    %1 = vector.load %arg2[%c0_1, %c0_2] : memref<2x32xf32, #tpu.memory_space<vmem>>, vector<2x32xf32>
    %2 = vector.extract_strided_slice %0 {offsets = [0, 0], sizes = [2, 1], strides = [1, 1]} : vector<2x16xf32> to vector<2x1xf32>
    %3 = vector.broadcast %2 : vector<2x1xf32> to vector<2x32xf32>
    %4 = arith.mulf %3, %1 : vector<2x32xf32>
    %c0_3 = arith.constant 0 : index
    %c0_4 = arith.constant 0 : index
    %5 = vector.load %arg3[%c0_3, %c0_4] : memref<2x512xf32, #tpu.memory_space<vmem>>, vector<2x32xf32>
    tpu.vector_store %arg3[%c0_3, %c0_4], %4 {strides = array<i32>} : memref<2x512xf32, #tpu.memory_space<vmem>>, vector<2x32xf32>,
    %6 = vector.extract_strided_slice %0 {offsets = [0, 1], sizes = [2, 1], strides = [1, 1]} : vector<2x16xf32> to vector<2x1xf32>
    %7 = vector.broadcast %6 : vector<2x1xf32> to vector<2x32xf32>
    %8 = arith.mulf %7, %1 : vector<2x32xf32>
    %c0_5 = arith.constant 0 : index
    %c32 = arith.constant 32 : index
    %9 = vector.load %arg3[%c0_5, %c32] : memref<2x512xf32, #tpu.memory_space<vmem>>, vector<2x32xf32>
    tpu.vector_store %arg3[%c0_5, %c32], %8 {strides = array<i32>} : memref<2x512xf32, #tpu.memory_space<vmem>>, vector<2x32xf32>,
    %10 = vector.extract_strided_slice %0 {offsets = [0, 2], sizes = [2, 1], strides = [1, 1]} : vector<2x16xf32> to vector<2x1xf32>
    %11 = vector.broadcast %10 : vector<2x1xf32> to vector<2x32xf32>
    %12 = arith.mulf %11, %1 : vector<2x32xf32>
    %c0_6 = arith.constant 0 : index
    %c64 = arith.constant 64 : index
    %13 = vector.load %arg3[%c0_6, %c64] : memref<2x512xf32, #tpu.memory_space<vmem>>, vector<2x32xf32>
    tpu.vector_store %arg3[%c0_6, %c64], %12 {strides = array<i32>} : memref<2x512xf32, #tpu.memory_space<vmem>>, vector<2x32xf32>,
    %14 = vector.extract_strided_slice %0 {offsets = [0, 3], sizes = [2, 1], strides = [1, 1]} : vector<2x16xf32> to vector<2x1xf32>
    %15 = vector.broadcast %14 : vector<2x1xf32> to vector<2x32xf32>
    %16 = arith.mulf %15, %1 : vector<2x32xf32>
    %c0_7 = arith.constant 0 : index
    %c96 = arith.constant 96 : index
    %17 = vector.load %arg3[%c0_7, %c96] : memref<2x512xf32, #tpu.memory_space<vmem>>, vector<2x32xf32>
    tpu.vector_store %arg3[%c0_7, %c96], %16 {strides = array<i32>} : memref<2x512xf32, #tpu.memory_space<vmem>>, vector<2x32xf32>,
    %18 = vector.extract_strided_slice %0 {offsets = [0, 4], sizes = [2, 1], strides = [1, 1]} : vector<2x16xf32> to vector<2x1xf32>
    %19 = vector.broadcast %18 : vector<2x1xf32> to vector<2x32xf32>
    %20 = arith.mulf %19, %1 : vector<2x32xf32>
    %c0_8 = arith.constant 0 : index
    %c128 = arith.constant 128 : index
    %21 = vector.load %arg3[%c0_8, %c128] : memref<2x512xf32, #tpu.memory_space<vmem>>, vector<2x32xf32>
    tpu.vector_store %arg3[%c0_8, %c128], %20 {strides = array<i32>} : memref<2x512xf32, #tpu.memory_space<vmem>>, vector<2x32xf32>,
    %22 = vector.extract_strided_slice %0 {offsets = [0, 5], sizes = [2, 1], strides = [1, 1]} : vector<2x16xf32> to vector<2x1xf32>
    %23 = vector.broadcast %22 : vector<2x1xf32> to vector<2x32xf32>
    %24 = arith.mulf %23, %1 : vector<2x32xf32>
    %c0_9 = arith.constant 0 : index
    %c160 = arith.constant 160 : index
    %25 = vector.load %arg3[%c0_9, %c160] : memref<2x512xf32, #tpu.memory_space<vmem>>, vector<2x32xf32>
    tpu.vector_store %arg3[%c0_9, %c160], %24 {strides = array<i32>} : memref<2x512xf32, #tpu.memory_space<vmem>>, vector<2x32xf32>,
    %26 = vector.extract_strided_slice %0 {offsets = [0, 6], sizes = [2, 1], strides = [1, 1]} : vector<2x16xf32> to vector<2x1xf32>
    %27 = vector.broadcast %26 : vector<2x1xf32> to vector<2x32xf32>
    %28 = arith.mulf %27, %1 : vector<2x32xf32>
    %c0_10 = arith.constant 0 : index
    %c192 = arith.constant 192 : index
    %29 = vector.load %arg3[%c0_10, %c192] : memref<2x512xf32, #tpu.memory_space<vmem>>, vector<2x32xf32>
    tpu.vector_store %arg3[%c0_10, %c192], %28 {strides = array<i32>} : memref<2x512xf32, #tpu.memory_space<vmem>>, vector<2x32xf32>,
    %30 = vector.extract_strided_slice %0 {offsets = [0, 7], sizes = [2, 1], strides = [1, 1]} : vector<2x16xf32> to vector<2x1xf32>
    %31 = vector.broadcast %30 : vector<2x1xf32> to vector<2x32xf32>
    %32 = arith.mulf %31, %1 : vector<2x32xf32>
    %c0_11 = arith.constant 0 : index
    %c224 = arith.constant 224 : index
    %33 = vector.load %arg3[%c0_11, %c224] : memref<2x512xf32, #tpu.memory_space<vmem>>, vector<2x32xf32>
    tpu.vector_store %arg3[%c0_11, %c224], %32 {strides = array<i32>} : memref<2x512xf32, #tpu.memory_space<vmem>>, vector<2x32xf32>,
    %34 = vector.extract_strided_slice %0 {offsets = [0, 8], sizes = [2, 1], strides = [1, 1]} : vector<2x16xf32> to vector<2x1xf32>
    %35 = vector.broadcast %34 : vector<2x1xf32> to vector<2x32xf32>
    %36 = arith.mulf %35, %1 : vector<2x32xf32>
    %c0_12 = arith.constant 0 : index
    %c256 = arith.constant 256 : index
    %37 = vector.load %arg3[%c0_12, %c256] : memref<2x512xf32, #tpu.memory_space<vmem>>, vector<2x32xf32>
    tpu.vector_store %arg3[%c0_12, %c256], %36 {strides = array<i32>} : memref<2x512xf32, #tpu.memory_space<vmem>>, vector<2x32xf32>,
    %38 = vector.extract_strided_slice %0 {offsets = [0, 9], sizes = [2, 1], strides = [1, 1]} : vector<2x16xf32> to vector<2x1xf32>
    %39 = vector.broadcast %38 : vector<2x1xf32> to vector<2x32xf32>
    %40 = arith.mulf %39, %1 : vector<2x32xf32>
    %c0_13 = arith.constant 0 : index
    %c288 = arith.constant 288 : index
    %41 = vector.load %arg3[%c0_13, %c288] : memref<2x512xf32, #tpu.memory_space<vmem>>, vector<2x32xf32>
    tpu.vector_store %arg3[%c0_13, %c288], %40 {strides = array<i32>} : memref<2x512xf32, #tpu.memory_space<vmem>>, vector<2x32xf32>,
    %42 = vector.extract_strided_slice %0 {offsets = [0, 10], sizes = [2, 1], strides = [1, 1]} : vector<2x16xf32> to vector<2x1xf32>
    %43 = vector.broadcast %42 : vector<2x1xf32> to vector<2x32xf32>
    %44 = arith.mulf %43, %1 : vector<2x32xf32>
    %c0_14 = arith.constant 0 : index
    %c320 = arith.constant 320 : index
    %45 = vector.load %arg3[%c0_14, %c320] : memref<2x512xf32, #tpu.memory_space<vmem>>, vector<2x32xf32>
    tpu.vector_store %arg3[%c0_14, %c320], %44 {strides = array<i32>} : memref<2x512xf32, #tpu.memory_space<vmem>>, vector<2x32xf32>,
    %46 = vector.extract_strided_slice %0 {offsets = [0, 11], sizes = [2, 1], strides = [1, 1]} : vector<2x16xf32> to vector<2x1xf32>
    %47 = vector.broadcast %46 : vector<2x1xf32> to vector<2x32xf32>
    %48 = arith.mulf %47, %1 : vector<2x32xf32>
    %c0_15 = arith.constant 0 : index
    %c352 = arith.constant 352 : index
    %49 = vector.load %arg3[%c0_15, %c352] : memref<2x512xf32, #tpu.memory_space<vmem>>, vector<2x32xf32>
    tpu.vector_store %arg3[%c0_15, %c352], %48 {strides = array<i32>} : memref<2x512xf32, #tpu.memory_space<vmem>>, vector<2x32xf32>,
    %50 = vector.extract_strided_slice %0 {offsets = [0, 12], sizes = [2, 1], strides = [1, 1]} : vector<2x16xf32> to vector<2x1xf32>
    %51 = vector.broadcast %50 : vector<2x1xf32> to vector<2x32xf32>
    %52 = arith.mulf %51, %1 : vector<2x32xf32>
    %c0_16 = arith.constant 0 : index
    %c384 = arith.constant 384 : index
    %53 = vector.load %arg3[%c0_16, %c384] : memref<2x512xf32, #tpu.memory_space<vmem>>, vector<2x32xf32>
    tpu.vector_store %arg3[%c0_16, %c384], %52 {strides = array<i32>} : memref<2x512xf32, #tpu.memory_space<vmem>>, vector<2x32xf32>,
    %54 = vector.extract_strided_slice %0 {offsets = [0, 13], sizes = [2, 1], strides = [1, 1]} : vector<2x16xf32> to vector<2x1xf32>
    %55 = vector.broadcast %54 : vector<2x1xf32> to vector<2x32xf32>
    %56 = arith.mulf %55, %1 : vector<2x32xf32>
    %c0_17 = arith.constant 0 : index
    %c416 = arith.constant 416 : index
    %57 = vector.load %arg3[%c0_17, %c416] : memref<2x512xf32, #tpu.memory_space<vmem>>, vector<2x32xf32>
    tpu.vector_store %arg3[%c0_17, %c416], %56 {strides = array<i32>} : memref<2x512xf32, #tpu.memory_space<vmem>>, vector<2x32xf32>,
    %58 = vector.extract_strided_slice %0 {offsets = [0, 14], sizes = [2, 1], strides = [1, 1]} : vector<2x16xf32> to vector<2x1xf32>
    %59 = vector.broadcast %58 : vector<2x1xf32> to vector<2x32xf32>
    %60 = arith.mulf %59, %1 : vector<2x32xf32>
    %c0_18 = arith.constant 0 : index
    %c448 = arith.constant 448 : index
    %61 = vector.load %arg3[%c0_18, %c448] : memref<2x512xf32, #tpu.memory_space<vmem>>, vector<2x32xf32>
    tpu.vector_store %arg3[%c0_18, %c448], %60 {strides = array<i32>} : memref<2x512xf32, #tpu.memory_space<vmem>>, vector<2x32xf32>,
    %62 = vector.extract_strided_slice %0 {offsets = [0, 15], sizes = [2, 1], strides = [1, 1]} : vector<2x16xf32> to vector<2x1xf32>
    %63 = vector.broadcast %62 : vector<2x1xf32> to vector<2x32xf32>
    %64 = arith.mulf %63, %1 : vector<2x32xf32>
    %c0_19 = arith.constant 0 : index
    %c480 = arith.constant 480 : index
    %65 = vector.load %arg3[%c0_19, %c480] : memref<2x512xf32, #tpu.memory_space<vmem>>, vector<2x32xf32>
    tpu.vector_store %arg3[%c0_19, %c480], %64 {strides = array<i32>} : memref<2x512xf32, #tpu.memory_space<vmem>>, vector<2x32xf32>,
    return
  }
  func.func @transform_0(%arg0: i32) -> (i32, i32) {
    %c0_i32 = arith.constant 0 : i32
    %c0_i32_0 = arith.constant 0 : i32
    return %arg0, %c0_i32 : i32, i32
  }
  func.func @transform_1(%arg0: i32) -> (i32, i32) {
    %c0_i32 = arith.constant 0 : i32
    %c0_i32_0 = arith.constant 0 : i32
    return %arg0, %c0_i32 : i32, i32
  }
  func.func @transform_2(%arg0: i32) -> (i32, i32) {
    %c0_i32 = arith.constant 0 : i32
    %c0_i32_0 = arith.constant 0 : i32
    return %arg0, %c0_i32 : i32, i32
  }
}

</mosaic_0001>

<bundles_post_ra>
// kernel: tpu_custom_call.1
= control target key start
LH: loop header
LB: loop body
LE: loop exit
PB: predicated region body
PF: predicated region fallthrough
CT: control target
= control target key end

     0   :  { %7 = vsyncpa [#allocation3], 0  ;;  %s447_s0 = inlined_call_operand.hbm [shape: f32[2,16], index: 0, kind: input, shape index: {}]   ;;  %s448_s1 = inlined_call_operand.vmem [shape: f32[2,32], index: 1, kind: input, shape index: {}]   ;;  %s449_s2 = inlined_call_operand.hbm [shape: f32[2,512], index: 2, kind: output, shape index: {}]  }
   0x1   :  { %8 = vsyncpa [#allocation4], 0  ;;  %s361_s9 = smov [#allocation2]   ;;  %s313_s13 = scalar_lea.hbm %s447_s0, 32 }
   0x2   :  { %s15_s10 = sshll.u32 %s361_s9, 4  ;;  %p314_p0 = scmp.ne.s32.totalorder %s447_s0, %s313_s13  ;;  %s16_s10 = int_to_ptr.vmem [resolvable:$true] %s15_s10 }
   0x3   :  { %p317_p1 = scmp.lt.u32.totalorder %s313_s13, %s447_s0 }
   0x5   :  { %p319_p2 = pnand %p317_p1, %p314_p0 }
   0x7   :  { %322 = shalt.err (!%p319_p2)
}
   0x8   :  { %s323_s18 = scalar_lea.vmem %s16_s10, 32  ;;  %p328_p4 = scmp.lt.s32.totalorder %s16_s10, %s16_s10 }
   0x9   :  { %p324_p3 = scmp.ne.s32.totalorder %s16_s10, %s323_s18  ;;  %p329_p5 = scmp.lt.s32.totalorder %s323_s18, %s323_s18 }
   0xb   :  { %p330_p6 = por %p329_p5, %p328_p4 }
   0xd   :  { %p331_p7 = pnand %p330_p6, %p324_p3 }
   0xf   :  { %334 = shalt.err (!%p331_p7)
}
  0x10   :  { %18 = dma.hbm_to_vmem [thread:$0]  %s447_s0, 32, %s16_s10, [#allocation3]  }
  0x11   :  { %357 = dma.done.wait [#allocation3], 32  }
  0x12   :  { %358 = vsyncadd [#allocation3], 4294967264  ;;  %v362_v0 = vmov 9   ;;  %v363_v1 = vmov 1   ;;  %v24_v2 = vld [vmem:[#allocation2] sm:$0x3]  ;;  %v43_v19 = vlaneseq }
  0x13   :  { %298 = vset.pattern.permute.xlu1 %v362_v0  ;;  %296 = vset.pattern.permute.xlu0 %v363_v1  ;;  %v364_v3 = vmov 13   ;;  %v365_v4 = vmov 5   ;;  %v366_v5 = vmov 2   ;;  %v367_v6 = vmov 6   ;;  %v413_v22 = vld [vmem:[%s448_s1] sm:$0x3] }
  0x14   :  { %152 = vperm.xlu1 %298, %v24_v2   ;;  %35 = vperm.xlu0 %296, %v24_v2   ;;  %v368_v7 = vmov 10   ;;  %v369_v8 = vmov 3   ;;  %v370_v9 = vmov 14   ;;  %v371_v10 = vmov 15   ;;  %s379_s22 = smov 32   ;;  %s380_s1 = smov 64  }
  0x15   :  { %v372_v11 = vmov 7   ;;  %v373_v12 = vmov 8   ;;  %v374_v13 = vmov 11   ;;  %v375_v14 = vmov 0   ;;  %s381_s23 = smov 96   ;;  %s382_s24 = smov [#allocation5]  }
  0x16   :  { %v376_v15 = vmov 4   ;;  %v377_v16 = vmov 12   ;;  %v378_v17 = vmov 1983009808   ;;  %v44_v21 = vshrl.u32 %v43_v19, 7  ;;  %s265_s25 = sshll.u32 %s382_s24, 4  ;;  %s266_s25 = int_to_ptr.vmem [resolvable:$true] %s265_s25 }
  0x17   :  { %v41_v18 = vunpack.c.l.s4 %v378_v17  ;;  %vm32_vm0 = vcmask 254976   ;;  %vm50_vm1 = vcmask 517376   ;;  %vm68_vm2 = vcmask 779776   ;;  %s335_s26 = scalar_lea.vmem %s266_s25, 128  ;;  %p340_p9 = scmp.lt.s32.totalorder %s266_s25, %s266_s25 }
  0x18   :  { %299 = vset.pattern.permute.xlu1 %v364_v3  ;;  %297 = vset.pattern.permute.xlu0 %v365_v4  ;;  %vm86_vm3 = vcmask 1042176   ;;  %p336_p8 = scmp.ne.s32.totalorder %s266_s25, %s335_s26  ;;  %p341_p10 = scmp.lt.s32.totalorder %s335_s26, %s335_s26 }
  0x19   :  { %209 = vperm.xlu1 %299, %v24_v2   ;;  %95 = vperm.xlu0 %297, %v24_v2   ;;  %v42_v20 = vunpack.c.0.s8 %v41_v18 }
  0x1a   :  { %p342_p11 = por %p341_p10, %p340_p9 }
  0x1b   :  { %v45_v23 = vsub.s32 %v42_v20, %v44_v21 }
  0x1c   :  { %p343_p12 = pnand %p342_p11, %p336_p8 }
  0x1d   :  { %300 = vset.pattern.permute.xlu1 %v366_v5  ;;  %301 = vset.pattern.permute.xlu0 %v367_v6 }
  0x1e   :  { %53 = vperm.xlu1 %300, %v24_v2   ;;  %112 = vperm.xlu0 %301, %v24_v2  }
  0x22   :  { %302 = vset.pattern.permute.xlu1 %v368_v7  ;;  %304 = vset.pattern.permute.xlu0 %v369_v8 }
  0x23   :  { %169 = vperm.xlu1 %302, %v24_v2   ;;  %71 = vperm.xlu0 %304, %v24_v2  }
  0x27   :  { %303 = vset.pattern.permute.xlu1 %v370_v9  ;;  %307 = vset.pattern.permute.xlu0 %v371_v10 }
  0x28   :  { %226 = vperm.xlu1 %303, %v24_v2   ;;  %243 = vperm.xlu0 %307, %v24_v2  }
  0x2c   :  { %305 = vset.pattern.permute.xlu1 %v372_v11  ;;  %310 = vset.pattern.permute.xlu0 %v373_v12 }
  0x2d   :  { %129 = vperm.xlu1 %305, %v24_v2   ;;  %146 = vperm.xlu0 %310, %v24_v2  }
  0x31   :  { %306 = vset.pattern.permute.xlu1 %v374_v13  ;;  %312 = vset.pattern.permute.xlu0 %v371_v10 }
  0x32   :  { %186 = vperm.xlu1 %306, %v24_v2  }
  0x36   :  { %308 = vset.pattern.permute.xlu1 %v375_v14 }
  0x37   :  { %28 = vperm.xlu1 %308, %v24_v2  }
  0x3b   :  { %309 = vset.pattern.permute.xlu1 %v376_v15 }
  0x3c   :  { %89 = vperm.xlu1 %309, %v24_v2  }
  0x40   :  { %311 = vset.pattern.permute.xlu1 %v377_v16 }
  0x41   :  { %203 = vperm.xlu1 %311, %v24_v2  }
  0x93   :  { %v153_v24 = vpop.permute.xlu1 %152  ;;  %v36_v25 = vpop.permute.xlu0 %35 }
  0x94   :  { %v38_v26 = vmul.f32 %v36_v25, %v413_v22  ;;  %v155_v27 = vmul.f32 %v153_v24, %v413_v22 }
  0x96   :  { %v46_v28 = vrot.slane %v38_v26, %v45_v23  ;;  %v163_v32 = vrot.slane %v155_v27, %v45_v23 }
  0x98   :  { %v210_v29 = vpop.permute.xlu1 %209  ;;  %47 = vrot.lane.b32.xlu1 %v46_v28, %s379_s22  ;;  %v96_v30 = vpop.permute.xlu0 %95 }
  0x99   :  { %v98_v31 = vmul.f32 %v96_v30, %v413_v22  ;;  %v212_v33 = vmul.f32 %v210_v29, %v413_v22 }
  0x9b   :  { %v106_v34 = vrot.slane %v98_v31, %v45_v23  ;;  %v220_v39 = vrot.slane %v212_v33, %v45_v23 }
  0x9c   :  { %164 = vrot.lane.b32.xlu1 %v163_v32, %s379_s22 }
  0x9d   :  { %v54_v35 = vpop.permute.xlu1 %53  ;;  %107 = vrot.lane.b32.xlu0 %v106_v34, %s379_s22  ;;  %v113_v36 = vpop.permute.xlu0 %112 }
  0x9e   :  { %v56_v37 = vmul.f32 %v54_v35, %v413_v22  ;;  %v115_v38 = vmul.f32 %v113_v36, %v413_v22 }
  0xa0   :  { %v64_v40 = vrot.slane %v56_v37, %v45_v23  ;;  %v123_v41 = vrot.slane %v115_v38, %v45_v23 }
  0xa1   :  { %221 = vrot.lane.b32.xlu0 %v220_v39, %s379_s22 }
  0xa2   :  { %v170_v42 = vpop.permute.xlu1 %169  ;;  %65 = vrot.lane.b32.xlu1 %v64_v40, %s380_s1  ;;  %v72_v43 = vpop.permute.xlu0 %71 }
  0xa3   :  { %v172_v44 = vmul.f32 %v170_v42, %v413_v22  ;;  %v74_v45 = vmul.f32 %v72_v43, %v413_v22 }
  0xa5   :  { %v180_v46 = vrot.slane %v172_v44, %v45_v23  ;;  %124 = vrot.lane.b32.xlu0 %v123_v41, %s380_s1  ;;  %v82_v48 = vrot.slane %v74_v45, %v45_v23 }
  0xa7   :  { %v227_v47 = vpop.permute.xlu1 %226  ;;  %181 = vrot.lane.b32.xlu1 %v180_v46, %s380_s1  ;;  %v244_v50 = vpop.permute.xlu0 %243 }
  0xa8   :  { %v229_v49 = vmul.f32 %v227_v47, %v413_v22  ;;  %v246_v55 = vmul.f32 %v244_v50, %v413_v22 }
  0xaa   :  { %v237_v51 = vrot.slane %v229_v49, %v45_v23  ;;  %v254_v59 = vrot.slane %v246_v55, %v45_v23 }
  0xab   :  { %83 = vrot.lane.b32.xlu1 %v82_v48, %s381_s23 }
  0xac   :  { %v130_v52 = vpop.permute.xlu1 %129  ;;  %238 = vrot.lane.b32.xlu0 %v237_v51, %s380_s1  ;;  %v147_v53 = vpop.permute.xlu0 %146 }
  0xad   :  { %v132_v54 = vmul.f32 %v130_v52, %v413_v22  ;;  %v149_v56 = vmul.f32 %v147_v53, %v413_v22 }
  0xaf   :  { %v140_v57 = vrot.slane %v132_v54, %v45_v23  ;;  %150 = vst.msk [vmem:[#allocation5 + $0x4] sm:$0x3] %vm32_vm0, %v149_v56 }
  0xb1   :  { %v187_v58 = vpop.permute.xlu1 %186  ;;  %141 = vrot.lane.b32.xlu0 %v140_v57, %s381_s23 }
  0xb2   :  { %v189_v60 = vmul.f32 %v187_v58, %v413_v22 }
  0xb4   :  { %v197_v61 = vrot.slane %v189_v60, %v45_v23 }
  0xb5   :  { %255 = vrot.lane.b32.xlu0 %v254_v59, %s381_s23 }
  0xb6   :  { %198 = vrot.lane.b32.xlu1 %v197_v61, %s381_s23  ;;  %v29_v62 = vpop.permute.xlu1 %28 }
  0xb7   :  { %v31_v63 = vmul.f32 %v29_v62, %v413_v22 }
  0xb9   :  { %33 = vst.msk [vmem:[#allocation5] sm:$0x3] %vm32_vm0, %v31_v63 }
  0xbb   :  { %v90_v0 = vpop.permute.xlu1 %89 }
  0xbc   :  { %v92_v1 = vmul.f32 %v90_v0, %v413_v22 }
  0xbe   :  { %93 = vst.msk [vmem:[#allocation5 + $0x2] sm:$0x3] %vm32_vm0, %v92_v1 }
  0xc0   :  { %v204_v2 = vpop.permute.xlu1 %203 }
  0xc1   :  { %v206_v3 = vmul.f32 %v204_v2, %v413_v22 }
  0xc3   :  { %207 = vst.msk [vmem:[#allocation5 + $0x6] sm:$0x3] %vm32_vm0, %v206_v3 }
 0x10a   :  { %v48_v4 = vpop.permute.xlu1 %47 }
 0x10b   :  { %51 = vst.msk [vmem:[#allocation5] sm:$0x3] %vm50_vm1, %v48_v4 }
 0x10e   :  { %v165_v5 = vpop.permute.xlu1 %164 }
 0x10f   :  { %167 = vst.msk [vmem:[#allocation5 + $0x4] sm:$0x3] %vm50_vm1, %v165_v5  ;;  %v108_v6 = vpop.permute.xlu0 %107 }
 0x110   :  { %110 = vst.msk [vmem:[#allocation5 + $0x2] sm:$0x3] %vm50_vm1, %v108_v6 }
 0x113   :  { %v222_v7 = vpop.permute.xlu0 %221 }
 0x114   :  { %224 = vst.msk [vmem:[#allocation5 + $0x6] sm:$0x3] %vm50_vm1, %v222_v7  ;;  %v66_v8 = vpop.permute.xlu1 %65 }
 0x115   :  { %69 = vst.msk [vmem:[#allocation5] sm:$0x3] %vm68_vm2, %v66_v8 }
 0x117   :  { %v125_v9 = vpop.permute.xlu0 %124 }
 0x118   :  { %127 = vst.msk [vmem:[#allocation5 + $0x2] sm:$0x3] %vm68_vm2, %v125_v9 }
 0x119   :  { %v182_v10 = vpop.permute.xlu1 %181 }
 0x11a   :  { %184 = vst.msk [vmem:[#allocation5 + $0x4] sm:$0x3] %vm68_vm2, %v182_v10 }
 0x11d   :  { %v84_v11 = vpop.permute.xlu1 %83 }
 0x11e   :  { %v239_v12 = vpop.permute.xlu0 %238  ;;  %87 = vst.msk [vmem:[#allocation5] sm:$0x3] %vm86_vm3, %v84_v11 }
 0x11f   :  { %241 = vst.msk [vmem:[#allocation5 + $0x6] sm:$0x3] %vm68_vm2, %v239_v12 }
 0x123   :  { %v142_v13 = vpop.permute.xlu0 %141 }
 0x124   :  { %144 = vst.msk [vmem:[#allocation5 + $0x2] sm:$0x3] %vm86_vm3, %v142_v13 }
 0x127   :  { %v256_v14 = vpop.permute.xlu0 %255 }
 0x128   :  { %v199_v15 = vpop.permute.xlu1 %198  ;;  %258 = vst.msk [vmem:[#allocation5 + $0x6] sm:$0x3] %vm86_vm3, %v256_v14 }
 0x129   :  { %201 = vst.msk [vmem:[#allocation5 + $0x4] sm:$0x3] %vm86_vm3, %v199_v15 }
 0x12a   :  { %346 = shalt.err (!%p343_p12)
}
 0x12b   :  { %s347_s29 = scalar_lea.hbm %s449_s2, 128 }
 0x12c   :  { %p348_p13 = scmp.ne.s32.totalorder %s449_s2, %s347_s29  ;;  %p351_p0 = scmp.lt.u32.totalorder %s347_s29, %s449_s2 }
 0x12e   :  { %p353_p1 = pnand %p351_p0, %p348_p13 }
 0x130   :  { %356 = shalt.err (!%p353_p1)
}
 0x131   :  { %268 = dma.vmem_to_hbm [thread:$0]  %s266_s25, 128, %s449_s2, [#allocation4]  }
 0x132   :  { %359 = dma.done.wait [#allocation4], 128  }
 0x133   :  { %360 = vsyncadd [#allocation4], 4294967168 }
 0x134   :  { %272 = vsyncpa [#allocation3], 1 }
 0x135   :  { %273 = vsyncpa [#allocation4], 1 }

</bundles_post_ra>
